<compile_context>
chip_gen: v5e
topology: v5e:2x2
jax: 0.10.0
libtpu: 0.0.40
codegen_flags: <defaults>
</compile_context>

<pallas_src>
import jax
import jax.numpy as jnp
from jax.experimental import pallas as pl
from jax.experimental.pallas import tpu as pltpu


def _energy_kernel(x_ref, w1_ref, b1_ref, w2m_ref, b2m_ref, e_ref):
    # x:   [TB, 2D] bf16 (ctx ++ cand, concatenated on host)
    # w1:  [2D, H]  bf16 (resident)
    # b1:  [1, H]   f32  (resident)
    # w2m: [1, H]   bf16 (= mean(W2, axis=-1), resident)
    # b2m: [1, 1]   f32 in SMEM (= mean(b2))
    # e:   [1, TB]  f32  (lane-dense energies)
    h = jnp.dot(x_ref[...], w1_ref[...], preferred_element_type=jnp.float32)
    h = jax.nn.gelu(h + b1_ref[...], approximate=True)        # [TB, H] f32

    # Folded layer-2 + mean: [1, H] x [TB, H]^T -> [1, TB] (lane-dense).
    e = jax.lax.dot_general(
        w2m_ref[...], h.astype(jnp.bfloat16),
        dimension_numbers=(((1,), (1,)), ((), ())),
        preferred_element_type=jnp.float32)
    e_ref[...] = e + b2m_ref[0, 0]


def energy_based_scorer(context_emb, candidate_emb, params, *, tb=1024):
    """context_emb, candidate_emb: [B, D] float32.  Returns energy: [B] f32."""
    w1, b1, w2, b2 = params
    B, D = context_emb.shape
    H = w1.shape[1]
    K = 2 * D

    # Host-side one-time preprocessing: concat + bf16 cast (single DMA stream,
    # half the input HBM bytes) and weight folding.
    x = jnp.concatenate([context_emb, candidate_emb], axis=-1)
    x = x.astype(jnp.bfloat16)                                   # [B, 2D]
    w1b = w1.astype(jnp.bfloat16)                                # [2D, H]
    b1r = b1.reshape(1, H).astype(jnp.float32)                   # [1, H]
    w2m = jnp.mean(w2, axis=-1).reshape(1, H)                    # f32 mean first
    w2m = w2m.astype(jnp.bfloat16)                               # [1, H]
    b2m = jnp.mean(b2).reshape(1, 1).astype(jnp.float32)         # [1, 1]

    # Tile selection: big tiles to amortize per-step overhead; keep >=2 grid
    # steps when the batch allows it (v7x megacore), else one full-batch tile.
    if tb >= B:
        tb_eff = B // 2 if (B % 256 == 0 and B >= 256) else B
    else:
        tb_eff = tb
    assert tb_eff == B or tb_eff % 128 == 0, "tb must be a multiple of 128"
    num_tiles = pl.cdiv(B, tb_eff)

    cost = pl.CostEstimate(
        flops=2 * B * K * H + 2 * B * H,
        transcendentals=B * H,
        bytes_accessed=x.size * 2 + w1b.size * 2 + (2 * H + 1) * 4 + B * 4)

    out = pl.pallas_call(
        _energy_kernel,
        out_shape=jax.ShapeDtypeStruct((1, B), jnp.float32),
        grid=(num_tiles,),
        in_specs=[
            pl.BlockSpec((tb_eff, K), lambda i: (i, 0)),            # x tile
            pl.BlockSpec((K, H), lambda i: (0, 0)),                 # W1 (resident)
            pl.BlockSpec((1, H), lambda i: (0, 0)),                 # b1 (resident)
            pl.BlockSpec((1, H), lambda i: (0, 0)),                 # mean(W2) (resident)
            pl.BlockSpec(memory_space=pltpu.MemorySpace.SMEM),      # mean(b2) scalar
        ],
        out_specs=pl.BlockSpec((1, tb_eff), lambda i: (0, i)),      # lane-dense energies
        compiler_params=pltpu.CompilerParams(
            dimension_semantics=("parallel",),
            vmem_limit_bytes=32 * 1024 * 1024),
        cost_estimate=cost,
    )(x, w1b, b1r, w2m, b2m)

    return out[0]


def init_params(key, d_in, hidden):
    k1, k2 = jax.random.split(key)
    scale1 = 1.0 / jnp.sqrt(jnp.float32(d_in))
    scale2 = 1.0 / jnp.sqrt(jnp.float32(hidden))
    w1 = jax.random.normal(k1, (d_in, hidden), jnp.float32) * scale1
    b1 = jnp.zeros((1, hidden), jnp.float32)
    w2 = jax.random.normal(k2, (hidden, hidden), jnp.float32) * scale2
    b2 = jnp.zeros((1, hidden), jnp.float32)
    return (w1, b1, w2, b2)


if __name__ == "__main__":
    # Small demo shapes: 3 grid tiles of 128 rows, with a partial last block
    # (300 % 128 != 0) to exercise the pad-free boundary handling.
    B, D, H = 300, 32, 128
    key = jax.random.PRNGKey(0)
    k_ctx, k_cand, k_params = jax.random.split(key, 3)

    context_emb = jax.random.normal(k_ctx, (B, D), jnp.float32)
    candidate_emb = jax.random.normal(k_cand, (B, D), jnp.float32)
    params = init_params(k_params, 2 * D, H)

    energy = energy_based_scorer(context_emb, candidate_emb, params, tb=128)
    jax.block_until_ready(energy)

    # Pure-JAX f32 reference of the ORIGINAL (unfolded, concat-based) module.
    combined = jnp.concatenate([context_emb, candidate_emb], axis=-1)
    w1, b1, w2, b2 = params
    ref = jnp.mean(
        jax.nn.gelu(combined @ w1 + b1, approximate=True) @ w2 + b2, axis=-1)

    assert energy.shape == (B,)
    # bf16 MXU inputs -> loosened tolerance vs the f32 reference.
    assert jnp.allclose(energy, ref, atol=2e-2, rtol=2e-2), \
        float(jnp.max(jnp.abs(energy - ref)))

    print("KERNEL_OK")
</pallas_src>

<mosaic_0001>
module attributes {stable_mosaic.version = 11 : i64} {
  func.func @_energy_kernel(%arg0: i32, %arg1: memref<128x64xbf16, #tpu.memory_space<vmem>>, %arg2: memref<64x128xbf16, #tpu.memory_space<vmem>>, %arg3: memref<1x128xf32, #tpu.memory_space<vmem>>, %arg4: memref<1x128xbf16, #tpu.memory_space<vmem>>, %arg5: memref<1x1xf32, #tpu.memory_space<smem>>, %arg6: memref<1x128xf32, #tpu.memory_space<vmem>>) attributes {dimension_semantics = [#tpu.dimension_semantics<parallel>], iteration_bounds = array<i64: 3>, scalar_prefetch = 0 : i64, scratch_operands = 0 : i64, tpu.core_type = #tpu.core_type<tc>, window_params = [{transform_indices = @transform_0, window_bounds = array<i64: 128, 64>}, {pipeline_mode = #tpu.pipeline_mode<synchronous>, transform_indices = @transform_1, window_bounds = array<i64: 64, 128>}, {pipeline_mode = #tpu.pipeline_mode<synchronous>, transform_indices = @transform_2, window_bounds = array<i64: 1, 128>}, {pipeline_mode = #tpu.pipeline_mode<synchronous>, transform_indices = @transform_3, window_bounds = array<i64: 1, 128>}, {transform_indices = @transform_4, window_bounds = array<i64: 1, 1>}, {transform_indices = @transform_5, window_bounds = array<i64: 1, 128>}]} {
    %c0 = arith.constant 0 : index
    %c0_0 = arith.constant 0 : index
    %0 = vector.load %arg1[%c0, %c0_0] : memref<128x64xbf16, #tpu.memory_space<vmem>>, vector<128x64xbf16>
    %c0_1 = arith.constant 0 : index
    %c0_2 = arith.constant 0 : index
    %1 = vector.load %arg2[%c0_1, %c0_2] : memref<64x128xbf16, #tpu.memory_space<vmem>>, vector<64x128xbf16>
    %cst = arith.constant dense<0.000000e+00> : vector<128x128xf32>
    %2 = tpu.matmul %0, %1, %cst {dimension_numbers = #tpu.dot_dimension_numbers<[1], [0], [0], [1], [0, 0, 1, 1], [], []>} : vector<128x64xbf16>, vector<64x128xbf16>, vector<128x128xf32> -> vector<128x128xf32>
    %c0_3 = arith.constant 0 : index
    %c0_4 = arith.constant 0 : index
    %3 = vector.load %arg3[%c0_3, %c0_4] : memref<1x128xf32, #tpu.memory_space<vmem>>, vector<1x128xf32>
    %4 = vector.broadcast %3 : vector<1x128xf32> to vector<128x128xf32>
    %5 = arith.addf %2, %4 : vector<128x128xf32>
    %6 = arith.mulf %5, %5 : vector<128x128xf32>
    %7 = arith.mulf %5, %6 : vector<128x128xf32>
    %cst_5 = arith.constant 4.471500e-02 : f32
    %8 = vector.broadcast %cst_5 : f32 to vector<128x128xf32>
    %9 = arith.mulf %8, %7 : vector<128x128xf32>
    %10 = arith.addf %5, %9 : vector<128x128xf32>
    %cst_6 = arith.constant 0.797884583 : f32
    %11 = vector.broadcast %cst_6 : f32 to vector<128x128xf32>
    %12 = arith.mulf %11, %10 : vector<128x128xf32>
    %13 = math.tanh %12 : vector<128x128xf32>
    %cst_7 = arith.constant 1.000000e+00 : f32
    %14 = vector.broadcast %cst_7 : f32 to vector<128x128xf32>
    %15 = arith.addf %14, %13 : vector<128x128xf32>
    %cst_8 = arith.constant 5.000000e-01 : f32
    %16 = vector.broadcast %cst_8 : f32 to vector<128x128xf32>
    %17 = arith.mulf %16, %15 : vector<128x128xf32>
    %18 = arith.mulf %5, %17 : vector<128x128xf32>
    %c0_9 = arith.constant 0 : index
    %c0_10 = arith.constant 0 : index
    %19 = vector.load %arg4[%c0_9, %c0_10] : memref<1x128xbf16, #tpu.memory_space<vmem>>, vector<1x128xbf16>
    %20 = arith.truncf %18 : vector<128x128xf32> to vector<128x128xbf16>
    %cst_11 = arith.constant dense<0.000000e+00> : vector<1x128xf32>
    %21 = tpu.matmul %19, %20, %cst_11 {dimension_numbers = #tpu.dot_dimension_numbers<[1], [1], [0], [0], [0, 0, 1, 0], [], []>} : vector<1x128xbf16>, vector<128x128xbf16>, vector<1x128xf32> -> vector<1x128xf32>
    %c0_12 = arith.constant 0 : index
    %c0_13 = arith.constant 0 : index
    %22 = memref.load %arg5[%c0_12, %c0_13] : memref<1x1xf32, #tpu.memory_space<smem>>
    %23 = vector.broadcast %22 : f32 to vector<1x128xf32>
    %24 = arith.addf %21, %23 : vector<1x128xf32>
    %c0_14 = arith.constant 0 : index
    %c0_15 = arith.constant 0 : index
    %25 = vector.load %arg6[%c0_14, %c0_15] : memref<1x128xf32, #tpu.memory_space<vmem>>, vector<1x128xf32>
    tpu.vector_store %arg6[%c0_14, %c0_15], %24 {strides = array<i32>} : memref<1x128xf32, #tpu.memory_space<vmem>>, vector<1x128xf32>,
    return
  }
  func.func @transform_0(%arg0: i32) -> (i32, i32) {
    %c0_i32 = arith.constant 0 : i32
    %c0_i32_0 = arith.constant 0 : i32
    return %arg0, %c0_i32 : i32, i32
  }
  func.func @transform_1(%arg0: i32) -> (i32, i32) {
    %c0_i32 = arith.constant 0 : i32
    %c0_i32_0 = arith.constant 0 : i32
    %c0_i32_1 = arith.constant 0 : i32
    return %c0_i32, %c0_i32_0 : i32, i32
  }
  func.func @transform_2(%arg0: i32) -> (i32, i32) {
    %c0_i32 = arith.constant 0 : i32
    %c0_i32_0 = arith.constant 0 : i32
    %c0_i32_1 = arith.constant 0 : i32
    return %c0_i32, %c0_i32_0 : i32, i32
  }
  func.func @transform_3(%arg0: i32) -> (i32, i32) {
    %c0_i32 = arith.constant 0 : i32
    %c0_i32_0 = arith.constant 0 : i32
    %c0_i32_1 = arith.constant 0 : i32
    return %c0_i32, %c0_i32_0 : i32, i32
  }
  func.func @transform_4(%arg0: i32) -> (i32, i32) {
    %c0_i32 = arith.constant 0 : i32
    %c0_i32_0 = arith.constant 0 : i32
    %c0_i32_1 = arith.constant 0 : i32
    return %c0_i32, %c0_i32_0 : i32, i32
  }
  func.func @transform_5(%arg0: i32) -> (i32, i32) {
    %c0_i32 = arith.constant 0 : i32
    %c0_i32_0 = arith.constant 0 : i32
    return %c0_i32, %arg0 : i32, i32
  }
}

</mosaic_0001>

<bundles_post_ra>
// kernel: tpu_custom_call.1
= control target key start
LH: loop header
LB: loop body
LE: loop exit
PB: predicated region body
PF: predicated region fallthrough
CT: control target
= control target key end

     0   :  { %s1139_s0 = inlined_call_operand.vmem [shape: bf16[300,64], index: 0, kind: input, shape index: {}]   ;;  %s1140_s1 = inlined_call_operand.vmem [shape: bf16[64,128], index: 1, kind: input, shape index: {}]   ;;  %s1141_s2 = inlined_call_operand.vmem [shape: f32[1,128], index: 2, kind: input, shape index: {}]   ;;  %s1142_s3 = inlined_call_operand.vmem [shape: bf16[1,128], index: 3, kind: input, shape index: {}]   ;;  %s1143_s4 = inlined_call_operand.<no memory space> [shape: f32[1,1], index: 4, kind: input, shape index: {}]   ;;  %s1144_s5 = inlined_call_operand.hbm [shape: f32[1,300], index: 5, kind: output, shape index: {}]  }
   0x1   :  { %10 = sst [smem:[#allocation2]] %s1143_s4 }
   0x2   :  { %11 = vsyncpa [#allocation4], 0 }
   0x3   :  { %13 = vsyncpa [#allocation4 + $0x1], 0  ;;  %s902_s20 = smov 0   ;;  %s904_s21 = smov 0  }
   0x4   :  { %s906_s22 = smov 0   ;;  %s908_s23 = smov 0  }
   0x5 LB: > { %s923_s4 = sadd.s32 4294967295, %s867_s23   ;;  %s649_s24 = sadd.s32 4294967294, %s867_s23   ;;  %s867_s23 = sphi %s908_s23, %s1150_s23   ;;  %s863_s22 = sphi %s906_s22, %s1149_s22   ;;  %s859_s21 = sphi %s904_s21, %s1148_s21   ;;  %s855_s20 = sphi %s902_s20, %s1147_s20  }
   0x6   : > { %s927_s25 = sadd.s32 1, %s867_s23   ;;  %s136_s26 = sadd.s32 1, %s863_s22 }
   0x7   : > { %s133_s27 = ssub.s32 %s867_s23, %s927_s25  ;;  %p146_p0 = scmp.ne.s32.totalorder %s863_s22, %s859_s21 }
   0x8   : > { %p134_p1 = scmp.eq.s32.totalorder %s133_s27, 0  ;;  %p147_p2 = scmp.eq.s32.totalorder %s923_s4, 2 }
   0x9   : > { %p152_p3 = scmp.ne.s32.totalorder %s859_s21, %s855_s20  ;;  %p153_p4 = scmp.eq.s32.totalorder %s649_s24, 2 }
   0xa   : > { %s938_s28 = scalar_select %p134_p1, %s863_s22, %s136_s26  }
   0xb   : > { %p940_p5 = por %p147_p2, %p146_p0  ;;  %p944_p6 = por %p153_p4, %p152_p3 }
   0xc   : > { %p652_p7 = scmp.ge.s32.totalorder %s867_s23, 1  ;;  %p200_p8 = scmp.lt.s32.totalorder %s867_s23, 4 }
   0xe   : > { %p201_p9 = pnand %p652_p7, %p200_p8 }
   0xf   : > { %s653_s8 = sshll.u32 (!%p201_p9), %s923_s4, 4  ;;  %s565_s6 = sld [smem:[#allocation2]] (!%p201_p9) }
  0x10   : > { %204 = sbr.rel (%p201_p9) target bundleno = 417 (0x1a1), region = 40  ;;  %p236_p10 = scmp.lt.s32.totalorder (!%p201_p9), %s653_s8, 37 }
  0x11   : > { %s229_s7 = sand.u32 (!%p201_p9), 1, %s859_s21   ;;  %s590_s10 = scalar_lea.hbm (!%p201_p9), %s1144_s5, %s923_s4 }
  0x12   : > { %s230_s11 = scalar_lea.vmem (!%p201_p9), [#allocation3], %s229_s7  ;;  %s582_s14 = scalar_lea.sflag (!%p201_p9), [#allocation4], %s229_s7 }
  0x13   : > { %s592_s12 = sshll.u32 (!%p201_p9), %s230_s11, 4  ;;  %s825_s4 = scalar_lea.hbm (!%p201_p9), %s1144_s5, 3  ;;  %s593_s12 = int_to_ptr.vmem [resolvable:$true] %s592_s12 }
  0x15   : > { %v724_v0 = vld [vmem:[%s1140_s1 + $0x18] sm:$0xff]  ;;  %v723_v1 = vld [vmem:[%s1140_s1 + $0x10] sm:$0xff]  ;;  %s1152_s8 = smov (!%p236_p10, %s653_s8), 37  ;;  %v722_v2 = vld [vmem:[%s1140_s1 + $0x8] sm:$0xff]  ;;  %vm338_vm0 = vcmask 523264  }
  0x16   : > { %725 = vmatpush.bf16.msra.mxu2 %v724_v0  ;;  %726 = vmatpush.bf16.msra.mxu3 %v724_v0  ;;  %s654_s13 = sshll.u32 %s1152_s8, 2  ;;  %v721_v3 = vld [vmem:[%s1140_s1] sm:$0xff] }
  0x17   : > { %367 = vmatpush.bf16.msra.mxu0 %v724_v0  ;;  %s239_s18 = scalar_lea.vmem %s1139_s0, %s654_s13  ;;  %v973_v18 = vld [vmem:[%s1141_s2] ss:$0 sm:$0xff]  ;;  %s594_s13 = sshll.u32 %s590_s10, 4  ;;  %s595_s13 = int_to_ptr.hbm [resolvable:$true] %s594_s13 }
  0x18   : > { %v716_v4 = vld [vmem:[%s239_s18 + $0x18] sm:$0xff]  ;;  %v719_v5 = vld [vmem:[%s239_s18 + $0x30] sm:$0xff]  ;;  %v713_v6 = vld [vmem:[%s239_s18] sm:$0xff]  ;;  %s819_s15 = sshra.s32 %s595_s13, 4  ;;  %s820_s15 = int_to_ptr.hbm [resolvable:$true] %s819_s15 }
  0x19   : > { %v717_v7 = vld [vmem:[%s239_s18 + $0x20] sm:$0xff]  ;;  %v720_v8 = vld [vmem:[%s239_s18 + $0x38] sm:$0xff]  ;;  %v714_v9 = vld [vmem:[%s239_s18 + $0x8] sm:$0xff]  ;;  %s821_s16 = scalar_lea.hbm %s820_s15, 1  ;;  %p826_p0 = scmp.lt.s32.totalorder %s820_s15, %s1144_s5 }
  0x1a   : > { %727 = vmatpush.bf16.msra.mxu2 %v723_v1  ;;  %728 = vmatpush.bf16.msra.mxu3 %v723_v1  ;;  %v718_v10 = vld [vmem:[%s239_s18 + $0x28] sm:$0xff]  ;;  %v715_v11 = vld [vmem:[%s239_s18 + $0x10] sm:$0xff]  ;;  %p822_p11 = scmp.ne.s32.totalorder %s820_s15, %s821_s16  ;;  %p827_p1 = scmp.lt.s32.totalorder %s825_s4, %s821_s16 }
  0x1b   : > { %368 = vmatpush.bf16.msra.mxu0 %v723_v1 }
  0x1c   : > { %p823_p12 = pnand %p822_p11, %p940_p5  ;;  %p828_p2 = por %p827_p1, %p826_p0 }
  0x1e   : > { %729 = vmatpush.bf16.msra.mxu2 %v722_v2  ;;  %730 = vmatpush.bf16.msra.mxu3 %v722_v2  ;;  %p824_p13 = pneg %p823_p12 }
  0x1f   : > { %369 = vmatpush.bf16.msra.mxu0 %v722_v2 }
  0x20   : > { %p829_p3 = pnand %p828_p2, %p824_p13 }
  0x22   : > { %731 = vmatpush.bf16.msra.mxu2 %v721_v3  ;;  %732 = vmatpush.bf16.msra.mxu3 %v721_v3 }
  0x23   : > { %370 = vmatpush.bf16.msra.mxu0 %v721_v3 }
  0x25   : > { %706 = vmatmul.msk.bf16.vlgmr.msra.gmra.mxu2 %vm338_vm0, %v716_v4  ;;  %709 = vmatmul.msk.bf16.vlgmr.msra.gmra.mxu3 %vm338_vm0, %v719_v5 }
  0x26   : > { %703 = vmatmul.msk.bf16.vlgmr.msra.gmra.mxu0 %vm338_vm0, %v713_v6 }
  0x35   : > { %707 = vmatmul.msk.bf16.gmra.mxu2 %vm338_vm0, %v717_v7  ;;  %710 = vmatmul.msk.bf16.gmra.mxu3 %vm338_vm0, %v720_v8 }
  0x36   : > { %704 = vmatmul.msk.bf16.gmra.mxu0 %vm338_vm0, %v714_v9 }
  0x45   : > { %708 = vmatmul.msk.bf16.gmra.mxu2 %vm338_vm0, %v718_v10 }
  0x46   : > { %705 = vmatmul.msk.bf16.gmra.mxu0 %vm338_vm0, %v715_v11 }
  0xa3   : > { %v966_v12 = vpop.f32.mrf.mxu0 }
  0xa8   : > { %v387_v13 = vpop.f32.mrf.mxu2  ;;  %v402_v14 = vpop.f32.mrf.mxu3 }
  0xa9   : > { %v981_v21 = vadd.f32 %v973_v18, %v402_v14  ;;  %v1022_v61 = vadd.f32 %v973_v18, %v387_v13 }
  0xab   : > { %v968_v15 = vpop.f32.mrf.mxu0  ;;  %v424_v26 = vmul.f32 %v981_v21, %v981_v21  ;;  %v418_v7 = vmul.f32 %v1022_v61, %v1022_v61 }
  0xad   : > { %v440_v30 = vmul.f32 %v424_v26, %v981_v21 }
  0xaf   : > { %v456_v38 = vmul.f32 0.044715, %v440_v30 }
  0xb0   : > { %v389_v16 = vpop.f32.mrf.mxu2  ;;  %v404_v17 = vpop.f32.mrf.mxu3 }
  0xb1   : > { %v976_v19 = vadd.f32 %v973_v18, %v404_v17  ;;  %v472_v44 = vadd.f32 %v456_v38, %v981_v21  ;;  %v1018_v59 = vadd.f32 %v973_v18, %v389_v16 }
  0xb3   : > { %v978_v20 = vpop.f32.mrf.mxu0  ;;  %v425_v22 = vmul.f32 %v976_v19, %v976_v19  ;;  %v488_v53 = vmul.f32 0.7978846, %v472_v44  ;;  %v419_v3 = vmul.f32 %v1018_v59, %v1018_v59 }
  0xb5   : > { %v441_v28 = vmul.f32 %v425_v22, %v976_v19 }
  0xb7   : > { %v457_v33 = vmul.f32 0.044715, %v441_v28  ;;  %v434_v28 = vmul.f32 %v418_v7, %v1022_v61 }
  0xb8   : > { %v392_v23 = vpop.f32.mrf.mxu2  ;;  %v407_v24 = vpop.f32.mrf.mxu3 }
  0xb9   : > { %v986_v25 = vadd.f32 %v973_v18, %v407_v24  ;;  %v473_v41 = vadd.f32 %v457_v33, %v976_v19  ;;  %v1005_v45 = vadd.f32 %v973_v18, %v392_v23  ;;  %v435_v24 = vmul.f32 %v419_v3, %v1018_v59 }
  0xbb   : > { %v426_v27 = vmul.f32 %v986_v25, %v986_v25  ;;  %v995_v31 = vpop.f32.mrf.mxu0  ;;  %v489_v50 = vmul.f32 0.7978846, %v473_v41  ;;  %v420_v54 = vmul.f32 %v1005_v45, %v1005_v45 }
  0xbd   : > { %v442_v29 = vmul.f32 %v426_v27, %v986_v25  ;;  %v436_v62 = vmul.f32 %v420_v54, %v1005_v45  ;;  %v1060_v54 = vadd.f32 %v973_v18, %v995_v31 }
  0xbf   : > { %v458_v32 = vmul.f32 0.044715, %v442_v29  ;;  %v452_v10 = vmul.f32 0.044715, %v436_v62 }
  0xc0   : > { %v394_v34 = vpop.f32.mrf.mxu2  ;;  %v409_v35 = vpop.f32.mrf.mxu3 }
  0xc1   : > { %v410_v36 = vadd.f32 %v973_v18, %v409_v35  ;;  %v474_v37 = vadd.f32 %v458_v32, %v986_v25  ;;  %v1001_v42 = vadd.f32 %v973_v18, %v394_v34  ;;  %v468_v32 = vadd.f32 %v452_v10, %v1005_v45 }
  0xc2   : > { %v1078_v10 = vadd.f32 %v973_v18, %v968_v15 }
  0xc3   : > { %v427_v39 = vmul.f32 %v410_v36, %v410_v36  ;;  %v490_v40 = vmul.f32 0.7978846, %v474_v37  ;;  %v421_v47 = vmul.f32 %v1001_v42, %v1001_v42  ;;  %v382_v48 = vpop.f32.mrf.mxu0 }
  0xc4   : > { %v1037_v17 = vadd.f32 %v973_v18, %v382_v48  ;;  %v1054_v48 = vadd.f32 %v973_v18, %v978_v20  ;;  %v413_v15 = vmul.f32 %v1078_v10, %v1078_v10 }
  0xc5   : > { %v443_v43 = vmul.f32 %v427_v39, %v410_v36  ;;  %773 = vtanh.f32 %v490_v40  ;;  %v437_v57 = vmul.f32 %v421_v47, %v1001_v42  ;;  %v451_v40 = vmul.f32 0.044715, %v435_v24 }
  0xc6   : > { %775 = vtanh.f32 %v489_v50  ;;  %v416_v35 = vmul.f32 %v1037_v17, %v1037_v17  ;;  %v450_v47 = vmul.f32 0.044715, %v434_v28  ;;  %v484_v50 = vmul.f32 0.7978846, %v468_v32 }
  0xc7   : > { %v459_v46 = vmul.f32 0.044715, %v443_v43  ;;  %v453_v0 = vmul.f32 0.044715, %v437_v57  ;;  %v414_v57 = vmul.f32 %v1054_v48, %v1054_v48 }
  0xc8   : > { %v397_v49 = vpop.f32.mrf.mxu2 }
  0xc9   : > { %v1010_v51 = vadd.f32 %v973_v18, %v397_v49  ;;  %v475_v52 = vadd.f32 %v459_v46, %v410_v36  ;;  %v469_v16 = vadd.f32 %v453_v0, %v1001_v42 }
  0xcb   : > { %v422_v55 = vmul.f32 %v1010_v51, %v1010_v51  ;;  %v491_v56 = vmul.f32 0.7978846, %v475_v52  ;;  %v774_v58 = vpop.eup %773  ;;  %v384_v8 = vpop.f32.mrf.mxu0  ;;  %v485_v39 = vmul.f32 0.7978846, %v469_v16  ;;  %v432_v52 = vmul.f32 %v416_v35, %v1037_v17 }
  0xcc   : > { %v522_v2 = vadd.f32 1.0, %v774_v58  ;;  %v776_v6 = vpop.eup %775  ;;  %v1041_v26 = vadd.f32 %v973_v18, %v384_v8 }
  0xcd   : > { %v438_v60 = vmul.f32 %v422_v55, %v1010_v51  ;;  %777 = vtanh.f32 %v491_v56  ;;  %v521_v30 = vadd.f32 1.0, %v776_v6  ;;  %v466_v56 = vadd.f32 %v450_v47, %v1022_v61 }
  0xce   : > { %779 = vtanh.f32 %v488_v53  ;;  %v538_v23 = vmul.f32 0.5, %v522_v2  ;;  %v417_v41 = vmul.f32 %v1041_v26, %v1041_v26  ;;  %v467_v53 = vadd.f32 %v451_v40, %v1018_v59 }
  0xcf   : > { %v454_v63 = vmul.f32 0.044715, %v438_v60  ;;  %v537_v46 = vmul.f32 0.5, %v521_v30  ;;  %v448_v58 = vmul.f32 0.044715, %v432_v52 }
  0xd0   : > { %v399_v1 = vpop.f32.mrf.mxu2  ;;  %v554_v37 = vmul.f32 %v538_v23, %v986_v25  ;;  %v433_v55 = vmul.f32 %v417_v41, %v1041_v26  ;;  %v483_v0 = vmul.f32 0.7978846, %v467_v53  ;;  %v482_v6 = vmul.f32 0.7978846, %v466_v56 }
  0xd1   : > { %v470_v4 = vadd.f32 %v454_v63, %v1010_v51  ;;  %v1029_v5 = vadd.f32 %v973_v18, %v399_v1  ;;  %v553_v20 = vmul.f32 %v537_v46, %v976_v19  ;;  %v415_v63 = vmul.f32 %v1060_v54, %v1060_v54 }
  0xd2   : > { %v449_v31 = vmul.f32 0.044715, %v433_v55  ;;  %v1072_v19 = vadd.f32 %v973_v18, %v966_v12  ;;  %v464_v7 = vadd.f32 %v448_v58, %v1037_v17 }
  0xd3   : > { %v778_v9 = vpop.eup %777  ;;  %v423_v11 = vmul.f32 %v1029_v5, %v1029_v5  ;;  %v486_v13 = vmul.f32 0.7978846, %v470_v4  ;;  %v430_v4 = vmul.f32 %v414_v57, %v1054_v48 }
  0xd4   : > { %v780_v14 = vpop.eup %779  ;;  %v523_v22 = vadd.f32 1.0, %v778_v9  ;;  %v412_v16 = vmul.f32 %v1072_v19, %v1072_v19  ;;  %v480_v28 = vmul.f32 0.7978846, %v464_v7 }
  0xd5   : > { %v439_v27 = vmul.f32 %v423_v11, %v1029_v5  ;;  %v520_v34 = vadd.f32 1.0, %v780_v14  ;;  %781 = vtanh.f32 %v486_v13  ;;  %v431_v11 = vmul.f32 %v415_v63, %v1060_v54 }
  0xd6   : > { %v539_v29 = vmul.f32 0.5, %v523_v22  ;;  %783 = vtanh.f32 %v485_v39  ;;  %v465_v13 = vadd.f32 %v449_v31, %v1041_v26  ;;  %v446_v22 = vmul.f32 0.044715, %v430_v4 }
  0xd7   : > { %v455_v33 = vmul.f32 0.044715, %v439_v27  ;;  %v536_v25 = vmul.f32 0.5, %v520_v34  ;;  %v447_v18 = vmul.f32 0.044715, %v431_v11  ;;  %v428_v34 = vmul.f32 %v412_v16, %v1072_v19 }
  0xd8   : > { %v555_v38 = vmul.f32 %v539_v29, %v410_v36  ;;  %v481_v29 = vmul.f32 0.7978846, %v465_v13  ;;  %v462_v35 = vadd.f32 %v446_v22, %v1054_v48 }
  0xd9   : > { %v471_v43 = vadd.f32 %v455_v33, %v1029_v5  ;;  %v552_v60 = vmul.f32 %v536_v25, %v981_v21  ;;  %v444_v41 = vmul.f32 0.044715, %v428_v34 }
  0xda   : > { %v564_v44 = vpack.c.bf16 %v555_v38, %v554_v37  ;;  %v463_v38 = vadd.f32 %v447_v18, %v1060_v54  ;;  %v478_v46 = vmul.f32 0.7978846, %v462_v35 }
  0xdb   : > { %v487_v49 = vmul.f32 0.7978846, %v471_v43  ;;  %v782_v36 = vpop.eup %781  ;;  %v563_v2 = vpack.c.bf16 %v553_v20, %v552_v60  ;;  %v460_v53 = vadd.f32 %v444_v41, %v1072_v19 }
  0xdc   : > { %567 = vmatpush.bf16.xpose.msra.mxu1 %v564_v44  ;;  %v518_v62 = vadd.f32 1.0, %v782_v36  ;;  %v784_v1 = vpop.eup %783 }
  0xdd   : > { %785 = vtanh.f32 %v487_v49  ;;  %v517_v14 = vadd.f32 1.0, %v784_v1  ;;  %v479_v49 = vmul.f32 0.7978846, %v463_v38  ;;  %v476_v58 = vmul.f32 0.7978846, %v460_v53 }
  0xde   : > { %787 = vtanh.f32 %v484_v50  ;;  %v534_v8 = vmul.f32 0.5, %v518_v62 }
  0xdf   : > { %789 = vtanh.f32 %v483_v0  ;;  %v533_v32 = vmul.f32 0.5, %v517_v14 }
  0xe0   : > { %791 = vtanh.f32 %v482_v6  ;;  %v550_v23 = vmul.f32 %v534_v8, %v1010_v51 }
  0xe1   : > { %793 = vtanh.f32 %v480_v28  ;;  %v549_v39 = vmul.f32 %v533_v32, %v1001_v42 }
  0xe2   : > { %795 = vtanh.f32 %v481_v29 }
  0xe3   : > { %v786_v3 = vpop.eup %785  ;;  %797 = vtanh.f32 %v478_v46 }
  0xe4   : > { %568 = vmatpush.bf16.xpose.msra.mxu1 %v563_v2  ;;  %v519_v21 = vadd.f32 1.0, %v786_v3  ;;  %v788_v9 = vpop.eup %787  ;;  %799 = vtanh.f32 %v479_v49 }
  0xe5   : > { %v516_v27 = vadd.f32 1.0, %v788_v9  ;;  %v790_v33 = vpop.eup %789  ;;  %801 = vtanh.f32 %v476_v58 }
  0xe6   : > { %v535_v12 = vmul.f32 0.5, %v519_v21  ;;  %v792_v51 = vpop.eup %791  ;;  %v515_v40 = vadd.f32 1.0, %v790_v33 }
  0xe7   : > { %v532_v37 = vmul.f32 0.5, %v516_v27  ;;  %v514_v44 = vadd.f32 1.0, %v792_v51  ;;  %v794_v50 = vpop.eup %793 }
  0xe8   : > { %v551_v24 = vmul.f32 %v535_v12, %v1029_v5  ;;  %v429_v5 = vmul.f32 %v413_v15, %v1078_v10  ;;  %v531_v25 = vmul.f32 0.5, %v515_v40  ;;  %v796_v36 = vpop.eup %795  ;;  %v512_v56 = vadd.f32 1.0, %v794_v50 }
  0xe9   : > { %v548_v43 = vmul.f32 %v532_v37, %v1005_v45  ;;  %v530_v55 = vmul.f32 0.5, %v514_v44  ;;  %v513_v45 = vadd.f32 1.0, %v796_v36  ;;  %v798_v62 = vpop.eup %797 }
  0xea   : > { %v562_v30 = vpack.c.bf16 %v551_v24, %v550_v23  ;;  %v445_v47 = vmul.f32 0.044715, %v429_v5  ;;  %v547_v42 = vmul.f32 %v531_v25, %v1018_v59  ;;  %v528_v31 = vmul.f32 0.5, %v512_v56  ;;  %v800_v1 = vpop.eup %799  ;;  %v556_v24 = vld [vmem:[%s1142_s3] sm:$0x1] }
  0xeb   : > { %v561_v52 = vpack.c.bf16 %v549_v39, %v548_v43  ;;  %v546_v57 = vmul.f32 %v530_v55, %v1022_v61  ;;  %v529_v0 = vmul.f32 0.5, %v513_v45  ;;  %v510_v4 = vadd.f32 1.0, %v798_v62  ;;  %v802_v6 = vpop.eup %801 }
  0xec   : > { %569 = vmatpush.bf16.xpose.msra.mxu1 %v562_v30  ;;  %v461_v20 = vadd.f32 %v445_v47, %v1078_v10  ;;  %v544_v2 = vmul.f32 %v528_v31, %v1037_v17  ;;  %v511_v59 = vadd.f32 1.0, %v800_v1  ;;  %v508_v13 = vadd.f32 1.0, %v802_v6 }
  0xed   : > { %v560_v63 = vpack.c.bf16 %v547_v42, %v546_v57  ;;  %v545_v3 = vmul.f32 %v529_v0, %v1041_v26  ;;  %v526_v21 = vmul.f32 0.5, %v510_v4 }
  0xee   : > { %v477_v60 = vmul.f32 0.7978846, %v461_v20  ;;  %v527_v61 = vmul.f32 0.5, %v511_v59  ;;  %v524_v17 = vmul.f32 0.5, %v508_v13 }
  0xef   : > { %v559_v7 = vpack.c.bf16 %v545_v3, %v544_v2  ;;  %v542_v9 = vmul.f32 %v526_v21, %v1054_v48  ;;  %v566_v48 = vstv %s565_s6 }
  0xf0   : > { %803 = vtanh.f32 %v477_v60  ;;  %v543_v11 = vmul.f32 %v527_v61, %v1060_v54  ;;  %v540_v26 = vmul.f32 %v524_v17, %v1072_v19 }
  0xf2   : > { %v558_v14 = vpack.c.bf16 %v543_v11, %v542_v9 }
  0xf4   : > { %570 = vmatpush.bf16.xpose.msra.mxu1 %v561_v52 }
  0xf6   : > { %v804_v8 = vpop.eup %803 }
  0xf7   : > { %v509_v12 = vadd.f32 1.0, %v804_v8 }
  0xf9   : > { %v525_v16 = vmul.f32 0.5, %v509_v12 }
  0xfb   : > { %v541_v22 = vmul.f32 %v525_v16, %v1078_v10 }
  0xfc   : > { %571 = vmatpush.bf16.xpose.msra.mxu1 %v560_v63 }
  0xfd   : > { %v557_v23 = vpack.c.bf16 %v541_v22, %v540_v26 }
 0x104   : > { %572 = vmatpush.bf16.xpose.msra.mxu1 %v559_v7 }
 0x10c   : > { %573 = vmatpush.bf16.xpose.msra.mxu1 %v558_v14 }
 0x114   : > { %574 = vmatpush.bf16.xpose.msra.mxu1 %v557_v23 }
 0x11b   : > { %575 = vmatmul.bf16.vlgmr.msra.gmra.mxu1 %v556_v24 }
 0x198   : > { %v576_v54 = vpop.f32.mrf.mxu1 }
 0x199   : > { %v577_v19 = vadd.f32 %v576_v54, %v566_v48 }
 0x19b   : > { %580 = vst [vmem:[%s230_s11] sm:$0x1] %v577_v19 }
 0x19c   : > { %832 = shalt.err (!%p829_p3)
}
 0x19d   : > { %733 = dma.vmem_to_hbm [thread:$0]  (%p940_p5), %s593_s12, 16, %s595_s13, %s582_s14  }
 0x1a0   : > { %v578_v10 = vpop.f32.mrf.mxu1 }
 0x1a1 PF: > { %p739_p4 = scmp.ge.s32.totalorder %s867_s23, 2  ;;  %s606_s26 = sand.u32 1, %s855_s20  }
 0x1a2   : > { %s607_s27 = scalar_lea.sflag [#allocation4], %s606_s26 }
 0x1a3   : > { %p736_p7 = pnand %p739_p4, %p944_p6 }
 0x1a5   : > { %p737_p8 = pneg %p736_p7 }
 0x1a7   : > { %850 = dma.done.wait (%p737_p8), %s607_s27, 16  }
 0x1a8   : > { %852 = vsyncadd (%p737_p8), %s607_s27, 4294967280  ;;  %p16_p9 = scmp.ge.s32.totalorder %s927_s25, 5   ;;  %s1147_s20 = smov %s859_s21 }
 0x1a9   : > { %s1148_s21 = smov %s863_s22  ;;  %s1149_s22 = smov %s938_s28 }
 0x1aa   : > { %s1150_s23 = smov %s927_s25  ;;  %18 = sbr.rel (!%p16_p9) target bundleno = 5 (0x5), region = 75 }
 0x1af   :  { %612 = vsyncpa [#allocation4], 1 }
 0x1b0   :  { %614 = vsyncpa [#allocation4 + $0x1], 1 }

</bundles_post_ra>
